<compile_context>
chip_gen: v7x
topology: tpu7x:2x2x1
jax: 0.10.0
libtpu: 0.0.40
codegen_flags: <defaults>
</compile_context>

<pallas_src>
import jax
import jax.numpy as jnp
from jax.experimental import pallas as pl
from jax.experimental.pallas import tpu as pltpu


def _eca_kernel(band_ref, x_ref, o_ref):
    # band_ref: (pc, pc)    block-diag band matrix for the channel conv (VMEM)
    # x_ref:    (1, pc, hw) current packed batch group (VMEM)
    # o_ref:    (1, pc, hw) output (VMEM)
    x = x_ref[0]                                         # (pc, hw), x.dtype
    hw = x.shape[-1]

    # Global average pool over the spatial (lane) axis, accumulated in f32.
    xf = x.astype(jnp.float32)
    pooled = jnp.sum(xf, axis=-1, keepdims=True) * (1.0 / hw)   # (pc, 1)

    # Channel-wise 1-D conv as one tiny matvec with the band matrix.
    z = jnp.dot(band_ref[...], pooled,
                preferred_element_type=jnp.float32)             # (pc, 1)

    # Sigmoid gate (EUP), then broadcast-multiply over the spatial lanes (VPU).
    gate = 1.0 / (1.0 + jnp.exp(-z))                            # (pc, 1)
    o_ref[0] = (xf * gate).astype(o_ref.dtype)


def _band_matrix(conv_w, c):
    """(k,) Conv1d weight -> (c, c) band matrix B with z = B @ y (cross-corr,
    zero padding (k-1)//2), matching torch.nn.Conv1d(1, 1, k, bias=False)."""
    k = conv_w.shape[0]
    pad = (k - 1) // 2
    i = jnp.arange(c)[:, None]
    m = jnp.arange(c)[None, :]
    j = m - i + pad                                      # tap index
    valid = (j >= 0) & (j < k)
    return jnp.where(valid, conv_w[jnp.clip(j, 0, k - 1)], 0.0).astype(jnp.float32)


def _choose_pack(b, c):
    """Batch elements per grid step so pack*c fills the 8-sublane vreg dim."""
    for p in range(min(b, 64), 0, -1):
        if b % p == 0 and (p * c) % 8 == 0 and p * c <= 1024:
            return p
    return 1


def eca_forward(x, conv_w):
    """x: (b, c, h, w); conv_w: (k,) float32 (Conv1d(1,1,k,bias=False) weight)."""
    b, c, h, w = x.shape
    hw = h * w
    pack = _choose_pack(b, c)
    pc = pack * c
    groups = b // pack

    # Contiguous reshape: (b, c, h, w) -> (groups, pack*c, h*w); no data movement.
    x_flat = x.reshape(groups, pc, hw)

    band = _band_matrix(conv_w, c)                                   # (c, c)
    # Block-diagonal so packed batch elements never mix channels.
    band_packed = jnp.kron(jnp.eye(pack, dtype=jnp.float32), band)   # (pc, pc)

    out_flat = pl.pallas_call(
        _eca_kernel,
        out_shape=jax.ShapeDtypeStruct((groups, pc, hw), x.dtype),
        grid_spec=pltpu.PrefetchScalarGridSpec(
            num_scalar_prefetch=0,
            grid=(groups,),
            in_specs=[
                # Constant index_map -> band matrix stays VMEM-resident.
                pl.BlockSpec((pc, pc), lambda i: (0, 0)),
                pl.BlockSpec((1, pc, hw), lambda i: (i, 0, 0)),
            ],
            out_specs=pl.BlockSpec((1, pc, hw), lambda i: (i, 0, 0)),
        ),
        compiler_params=pltpu.CompilerParams(
            dimension_semantics=("parallel",)
        ),
    )(band_packed, x_flat)

    return out_flat.reshape(b, c, h, w)


def eca_ref(x, conv_w):
    """Pure-JAX reference mirroring the PyTorch eca_layer forward exactly."""
    b, c, h, w = x.shape
    k = conv_w.shape[0]
    pad = (k - 1) // 2
    y = jnp.mean(x, axis=(2, 3))                         # AdaptiveAvgPool2d(1)
    y_pad = jnp.pad(y, ((0, 0), (pad, pad)))
    # Conv1d(1, 1, k, padding=pad, bias=False) across the channel axis
    z = sum(conv_w[j] * y_pad[:, j:j + c] for j in range(k))        # (b, c)
    gate = 1.0 / (1.0 + jnp.exp(-z))
    return x * gate[:, :, None, None]


if __name__ == "__main__":
    key = jax.random.PRNGKey(0)
    kx, kw = jax.random.split(key)

    b, c, h, w = 2, 4, 16, 16
    k_size = 3
    x = jax.random.normal(kx, (b, c, h, w), dtype=jnp.float32)

    # Conv1d(1, 1, k_size, bias=False) weight has shape (1, 1, k_size) -> (k_size,)
    conv_w = jax.random.normal(kw, (k_size,), dtype=jnp.float32) * 0.5

    out = eca_forward(x, conv_w)
    jax.block_until_ready(out)

    ref = eca_ref(x, conv_w)
    assert out.shape == (b, c, h, w)
    assert jnp.allclose(out, ref, atol=1e-5, rtol=1e-5), "mismatch vs reference"

    print("KERNEL_OK")
</pallas_src>

<mosaic_0001>
module attributes {stable_mosaic.version = 11 : i64} {
  func.func @_eca_kernel(%arg0: i32, %arg1: memref<8x8xf32, #tpu.memory_space<vmem>>, %arg2: memref<1x8x256xf32, #tpu.memory_space<vmem>>, %arg3: memref<1x8x256xf32, #tpu.memory_space<vmem>>) attributes {dimension_semantics = [#tpu.dimension_semantics<parallel>], iteration_bounds = array<i64: 1>, scalar_prefetch = 0 : i64, scratch_operands = 0 : i64, tpu.core_type = #tpu.core_type<tc>, window_params = [{pipeline_mode = #tpu.pipeline_mode<synchronous>, transform_indices = @transform_0, window_bounds = array<i64: 8, 8>}, {transform_indices = @transform_1, window_bounds = array<i64: 1, 8, 256>}, {transform_indices = @transform_2, window_bounds = array<i64: 1, 8, 256>}]} {
    %c0 = arith.constant 0 : index
    %c0_0 = arith.constant 0 : index
    %c0_1 = arith.constant 0 : index
    %0 = vector.load %arg2[%c0, %c0_0, %c0_1] : memref<1x8x256xf32, #tpu.memory_space<vmem>>, vector<1x8x256xf32>
    %1 = vector.shape_cast %0 : vector<1x8x256xf32> to vector<8x256xf32>
    %cst = arith.constant dense<0.000000e+00> : vector<8xf32>
    %2 = vector.multi_reduction <add>, %1, %cst [1] : vector<8x256xf32> to vector<8xf32>
    %3 = vector.shape_cast %2 : vector<8xf32> to vector<8x1xf32>
    %cst_2 = arith.constant 3.906250e-03 : f32
    %4 = vector.broadcast %cst_2 : f32 to vector<8x1xf32>
    %5 = arith.mulf %3, %4 : vector<8x1xf32>
    %c0_3 = arith.constant 0 : index
    %c0_4 = arith.constant 0 : index
    %6 = vector.load %arg1[%c0_3, %c0_4] : memref<8x8xf32, #tpu.memory_space<vmem>>, vector<8x8xf32>
    %cst_5 = arith.constant dense<0.000000e+00> : vector<8x1xf32>
    %7 = tpu.matmul %6, %5, %cst_5 {dimension_numbers = #tpu.dot_dimension_numbers<[1], [0], [0], [1], [0, 0, 1, 1], [], []>} : vector<8x8xf32>, vector<8x1xf32>, vector<8x1xf32> -> vector<8x1xf32>
    %cst_6 = arith.constant 0.000000e+00 : f32
    %8 = vector.broadcast %cst_6 : f32 to vector<8x1xf32>
    %9 = arith.subf %8, %7 : vector<8x1xf32>
    %10 = math.exp %9 : vector<8x1xf32>
    %cst_7 = arith.constant 1.000000e+00 : f32
    %11 = vector.broadcast %cst_7 : f32 to vector<8x1xf32>
    %12 = arith.addf %11, %10 : vector<8x1xf32>
    %cst_8 = arith.constant 1.000000e+00 : f32
    %13 = vector.broadcast %cst_8 : f32 to vector<8x1xf32>
    %14 = arith.divf %13, %12 : vector<8x1xf32>
    %15 = vector.broadcast %14 : vector<8x1xf32> to vector<8x256xf32>
    %16 = arith.mulf %1, %15 : vector<8x256xf32>
    %c0_9 = arith.constant 0 : index
    %c0_10 = arith.constant 0 : index
    %c0_11 = arith.constant 0 : index
    %17 = vector.load %arg3[%c0_9, %c0_10, %c0_11] : memref<1x8x256xf32, #tpu.memory_space<vmem>>, vector<1x8x256xf32>
    %18 = vector.shape_cast %17 : vector<1x8x256xf32> to vector<8x256xf32>
    %19 = vector.shape_cast %16 : vector<8x256xf32> to vector<1x8x256xf32>
    tpu.vector_store %arg3[%c0_9, %c0_10, %c0_11], %19 {strides = array<i32>} : memref<1x8x256xf32, #tpu.memory_space<vmem>>, vector<1x8x256xf32>,
    return
  }
  func.func @transform_0(%arg0: i32) -> (i32, i32) {
    %c0_i32 = arith.constant 0 : i32
    %c0_i32_0 = arith.constant 0 : i32
    %c0_i32_1 = arith.constant 0 : i32
    return %c0_i32, %c0_i32_0 : i32, i32
  }
  func.func @transform_1(%arg0: i32) -> (i32, i32, i32) {
    %c0_i32 = arith.constant 0 : i32
    %c0_i32_0 = arith.constant 0 : i32
    %c0_i32_1 = arith.constant 0 : i32
    return %arg0, %c0_i32, %c0_i32_0 : i32, i32, i32
  }
  func.func @transform_2(%arg0: i32) -> (i32, i32, i32) {
    %c0_i32 = arith.constant 0 : i32
    %c0_i32_0 = arith.constant 0 : i32
    %c0_i32_1 = arith.constant 0 : i32
    return %arg0, %c0_i32, %c0_i32_0 : i32, i32, i32
  }
}

</mosaic_0001>

<bundles_post_ra>
// kernel: tpu_custom_call.1
= control target key start
LH: loop header
LB: loop body
LE: loop exit
PB: predicated region body
PF: predicated region fallthrough
CT: control target
= control target key end

     0   :  { %7 = vsyncpa [#allocation3], 0  ;;  %s296_s0 = inlined_call_operand.hbm [shape: f32[8,8], index: 0, kind: input, shape index: {}]   ;;  %s297_s1 = inlined_call_operand.hbm [shape: f32[1,8,256], index: 1, kind: input, shape index: {}]   ;;  %s298_s2 = inlined_call_operand.hbm [shape: f32[1,8,256], index: 2, kind: output, shape index: {}]  }
   0x1   :  { %8 = vsyncpa [#allocation6], 0 }
   0x2   :  { %9 = vsyncpa [#allocation4], 0  ;;  %s239_s9 = smov [#allocation2]   ;;  %s240_s11 = smov [#allocation5]  }
   0x3   :  { %s16_s10 = sshll.u32 %s239_s9, 4  ;;  %s26_s12 = sshll.u32 %s240_s11, 4  ;;  %s17_s10 = int_to_ptr.vmem [resolvable:$true] %s16_s10  ;;  %s27_s12 = int_to_ptr.vmem [resolvable:$true] %s26_s12 }
   0x4   :  { %s167_s15 = scalar_lea.hbm %s296_s0, 128 }
   0x5   :  { %p168_p0 = scmp.ne.s32.totalorder %s296_s0, %s167_s15  ;;  %p171_p1 = scmp.lt.u32.totalorder %s167_s15, %s296_s0 }
   0x7   :  { %p173_p2 = pnand %p171_p1, %p168_p0 }
   0x9   :  { %176 = shalt.err (!%p173_p2)
}
   0xa   :  { %s177_s20 = scalar_lea.vmem %s17_s10, 128  ;;  %p182_p4 = scmp.lt.s32.totalorder %s17_s10, %s17_s10 }
   0xb   :  { %p178_p3 = scmp.ne.s32.totalorder %s17_s10, %s177_s20  ;;  %p183_p5 = scmp.lt.s32.totalorder %s177_s20, %s177_s20 }
   0xd   :  { %p184_p6 = por %p183_p5, %p182_p4 }
   0xf   :  { %p185_p7 = pnand %p184_p6, %p178_p3 }
  0x11   :  { %188 = shalt.err (!%p185_p7)
}
  0x12   :  { %19 = dma.hbm_to_vmem [thread:$0]  %s296_s0, 128, %s17_s10, [#allocation3]  }
  0x13   :  { %s189_s25 = scalar_lea.hbm %s297_s1, 256 }
  0x14   :  { %p190_p8 = scmp.ne.s32.totalorder %s297_s1, %s189_s25  ;;  %p193_p9 = scmp.lt.u32.totalorder %s189_s25, %s297_s1 }
  0x16   :  { %p195_p10 = pnand %p193_p9, %p190_p8 }
  0x18   :  { %198 = shalt.err (!%p195_p10)
}
  0x19   :  { %s199_s30 = scalar_lea.vmem %s27_s12, 256  ;;  %p204_p12 = scmp.lt.s32.totalorder %s27_s12, %s27_s12 }
  0x1a   :  { %p200_p11 = scmp.ne.s32.totalorder %s27_s12, %s199_s30  ;;  %p205_p13 = scmp.lt.s32.totalorder %s199_s30, %s199_s30 }
  0x1c   :  { %p206_p0 = por %p205_p13, %p204_p12 }
  0x1e   :  { %p207_p1 = pnand %p206_p0, %p200_p11 }
  0x20   :  { %210 = shalt.err (!%p207_p1)
}
  0x21   :  { %29 = dma.hbm_to_vmem [thread:$0]  %s297_s1, 256, %s27_s12, [#allocation6]  }
  0x22   :  { %233 = dma.done.wait [#allocation3], 128  }
  0x23   :  { %234 = vsyncadd [#allocation3], 4294967168 }
  0x24   :  { %235 = dma.done.wait [#allocation6], 256  }
  0x25   :  { %236 = vsyncadd [#allocation6], 4294967040  ;;  %v36_v0 = vld [vmem:[#allocation5] sm:$0xff]  ;;  %v37_v1 = vld [vmem:[#allocation5 + $0x8] sm:$0xff]  ;;  %v241_v3 = vmov 0.0   ;;  %vm242_vm0 = vmmov 0  }
  0x26   :  { %v38_v2 = vadd.f32 %v37_v1, %v36_v0  ;;  %151 = vmatprep.subr.mxu0 %v241_v3  ;;  %153 = vmatprep.mubr.msk.f32.mxu0 %vm242_vm0, %v241_v3  ;;  %v42_v6 = vld [vmem:[#allocation2] sm:$0xff]  ;;  %vm43_vm1 = vcmask 64512   ;;  %v243_v7 = vmov 0   ;;  %s244_s1 = smov [#allocation7]  }
  0x27   :  { %162 = vset.pattern.permute.xlu0 %v243_v7  ;;  %s138_s4 = sshll.u32 %s244_s1, 4  ;;  %s139_s4 = int_to_ptr.vmem [resolvable:$true] %s138_s4 }
  0x28   :  { %39 = vadd.xlane.f32.xlu0 %v38_v2  ;;  %s211_s5 = scalar_lea.vmem %s139_s4, 256  ;;  %p216_p3 = scmp.lt.s32.totalorder %s139_s4, %s139_s4 }
  0x29   :  { %p212_p2 = scmp.ne.s32.totalorder %s139_s4, %s211_s5  ;;  %p217_p4 = scmp.lt.s32.totalorder %s211_s5, %s211_s5 }
  0x2b   :  { %p218_p5 = por %p217_p4, %p216_p3 }
  0x2d   :  { %p219_p6 = pnand %p218_p5, %p212_p2 }
  0xb5   :  { %v40_v4 = vpop.xlane.xlu0 %39 }
  0xb6   :  { %v41_v5 = vmul.f32 0.00390625, %v40_v4 }
  0xb8   :  { %152 = vmatpush3.msra.mxu0 %v41_v5 }
  0xb9   :  { %154 = vmatmul.mubr.msk.f32.vlgmr.msra.gmra.mrb[0].mxu0 %vm43_vm1, %v42_v6 }
 0x18c   :  { %v113_v8 = vpop.f32.mrb[0].mxu0 }
 0x18d   :  { %v117_v9 = vsub.f32 0.0, %v113_v8  ;;  %v155_v10 = vpop.f32.mrb[1].mxu0 }
 0x18f   :  { %v118_v11 = vmul.f32 1.442695, %v117_v9 }
 0x191   :  { %163 = vpow2.f32 %v118_v11 }
 0x19b   :  { %v164_v12 = vpop.eup %163 }
 0x19c   :  { %v120_v13 = vadd.f32 1.0, %v164_v12 }
 0x19e   :  { %165 = vrcp.f32 %v120_v13 }
 0x1a8   :  { %v166_v14 = vpop.eup %165 }
 0x1a9   :  { %125 = vperm.xlu0 %162, %v166_v14  }
 0x228   :  { %v126_v15 = vpop.permute.xlu0 %125 }
 0x229   :  { %v128_v16 = vmul.f32 %v126_v15, %v36_v0  ;;  %v129_v17 = vmul.f32 %v126_v15, %v37_v1 }
 0x22b   :  { %130 = vst [vmem:[#allocation7] sm:$0xff] %v128_v16  ;;  %131 = vst [vmem:[#allocation7 + $0x8] sm:$0xff] %v129_v17 }
 0x22c   :  { %222 = shalt.err (!%p219_p6)
}
 0x22d   :  { %s223_s8 = scalar_lea.hbm %s298_s2, 256 }
 0x22e   :  { %p224_p7 = scmp.ne.s32.totalorder %s298_s2, %s223_s8  ;;  %p227_p8 = scmp.lt.u32.totalorder %s223_s8, %s298_s2 }
 0x230   :  { %p229_p9 = pnand %p227_p8, %p224_p7 }
 0x232   :  { %232 = shalt.err (!%p229_p9)
}
 0x233   :  { %141 = dma.vmem_to_hbm [thread:$0]  %s139_s4, 256, %s298_s2, [#allocation4]  }
 0x234   :  { %237 = dma.done.wait [#allocation4], 256  }
 0x235   :  { %238 = vsyncadd [#allocation4], 4294967040 }
 0x236   :  { %145 = vsyncpa [#allocation3], 1 }
 0x237   :  { %146 = vsyncpa [#allocation6], 1 }
 0x238   :  { %147 = vsyncpa [#allocation4], 1 }

</bundles_post_ra>
